<compile_context>
chip_gen: v5e
topology: v5e:2x2
jax: 0.10.0
libtpu: 0.0.40
codegen_flags: <defaults>
</compile_context>

<pallas_src>
import numpy as np
import jax
import jax.numpy as jnp
from jax.experimental import pallas as pl
from jax.experimental.pallas import tpu as pltpu

# Concrete config for the config-driven module (each layer tuple is the positional
# args of nn.Conv2d: in_ch, out_ch, kernel, stride, padding).
CONFIG = {
    'CycleGAN': {
        'Discriminator': {
            'layers': [
                (4, 8, 3, 2, 1),    # 16x16 -> 8x8
                (8, 16, 3, 2, 1),   # 8x8  -> 4x4
                (16, 1, 3, 1, 1),   # 4x4  -> 4x4
            ],
            'intermediate_activations': 'leaky_relu',
            'final_activation': 'sigmoid',
        }
    }
}

LEAKY_SLOPE = 0.01   # nn.LeakyReLU default negative_slope
BN_EPS = 1e-5        # nn.BatchNorm2d default eps
LANES = 128          # lane-dense width of every activation / weight operand


# ---------------- the fused Pallas kernel ----------------

def _make_fused_kernel(meta):
    """meta[l]: dict(B, hp=H_in+2, oh, ow, stride, bn) -- all static Python ints."""
    n_ops = 1 + sum(5 if m['bn'] else 2 for m in meta)

    def kernel(*refs):
        out_ref = refs[n_ops]
        scratch = refs[n_ops + 1:]

        # Zero the intermediate activation buffers once: their per-batch top/bottom
        # padding rows must read back as zeros for the next layer's H-taps.
        for s_ref in scratch:
            s_ref[...] = jnp.zeros_like(s_ref)

        src = refs[0]          # layer-0 input, row-packed (B*(H+2), 128) f32
        op, sc = 1, 0
        for m in meta:
            w_ref, b_ref = refs[op], refs[op + 1]
            B, hp, oh, ow, stride = m['B'], m['hp'], m['oh'], m['ow'], m['stride']

            # --- conv: 3 matmuls, one per kernel row kh (W-taps folded into w_ref) ---
            z = None
            for kh in range(3):
                parts = []
                for b in range(B):
                    start = b * hp + kh
                    if stride == 1:
                        parts.append(src[pl.ds(start, oh), :])
                    else:   # stride-2 H selection via strided row slice (no gather mm)
                        parts.append(src[pl.ds(start, oh, stride=stride), :])
                rk = parts[0] if B == 1 else jnp.concatenate(parts, axis=0)  # (B*oh,128)
                c = jnp.dot(rk.astype(jnp.bfloat16), w_ref[kh],
                            preferred_element_type=jnp.float32)
                z = c if z is None else z + c
            z = z + b_ref[...]              # conv bias (kept: LeakyReLU precedes BN)

            if m['bn']:
                p_ref, g_ref, be_ref = refs[op + 2], refs[op + 3], refs[op + 4]
                op += 5
                y = jnp.maximum(z, LEAKY_SLOPE * z)              # LeakyReLU
                inv_n = 1.0 / float(B * oh * ow)
                colsum = jnp.sum(y, axis=0, keepdims=True)       # (1,128) per-lane sums
                colsq = jnp.sum(y * y, axis=0, keepdims=True)
                # channel pooling + broadcast back to packed lanes, on the MXU
                mean = jnp.dot(colsum, p_ref[...],
                               preferred_element_type=jnp.float32) * inv_n
                msq = jnp.dot(colsq, p_ref[...],
                              preferred_element_type=jnp.float32) * inv_n
                var = jnp.maximum(msq - mean * mean, 0.0)        # clamp (review concern)
                scale = g_ref[...] * jax.lax.rsqrt(var + BN_EPS)
                shift = be_ref[...] - mean * scale
                ybn = y * scale + shift
                dst = scratch[sc]
                sc += 1
                for b in range(B):          # write interior rows of next layer's input
                    dst[pl.ds(b * (oh + 2) + 1, oh), :] = ybn[b * oh:(b + 1) * oh, :]
                src = dst
            else:
                op += 2
                out_ref[...] = 0.5 * (jnp.tanh(0.5 * z) + 1.0)   # sigmoid via EUP tanh

    return kernel


# ---------------- host-side operand packing (runs once, plain numpy) ----------------

def _pack_conv_weights(w_hwio, cin, cout, w_in, ow, stride):
    """Fold the W-direction (kw) gather + channel mixing of a 3x3 / pad-1 conv into
    3 lane-dense (128,128) matrices, one per kernel row kh.  bf16 MXU operand."""
    k = w_hwio.shape[0]
    m = np.zeros((k, LANES, LANES), np.float32)
    for kh in range(k):
        for ox in range(ow):
            for kw in range(k):
                ix = stride * ox + kw - 1
                if 0 <= ix < w_in:          # ix outside [0, W) == zero padding in W
                    m[kh, ix * cin:(ix + 1) * cin, ox * cout:(ox + 1) * cout] = \
                        w_hwio[kh, kw]
    return jnp.asarray(m, jnp.bfloat16)


def _pack_per_channel(vec, cout, ow):
    """Tile a per-channel (cout,) vector over the packed (ox*cout + co) lane layout."""
    out = np.zeros((1, LANES), np.float32)
    for ox in range(ow):
        out[0, ox * cout:(ox + 1) * cout] = vec
    return jnp.asarray(out)


def _channel_pool_matrix(cout, ow):
    """0/1 matrix P with P[ox*cout+c, ox'*cout+c] = 1: per-lane colsums @ P gives the
    per-channel total already broadcast back to every packed lane."""
    p = np.zeros((LANES, LANES), np.float32)
    for ox in range(ow):
        for oxp in range(ow):
            for c in range(cout):
                p[ox * cout + c, oxp * cout + c] = 1.0
    return jnp.asarray(p)


def init_params(key, layers_cfg):
    params = []
    for (cin, cout, k, s, p) in layers_cfg:
        key, k1, k2 = jax.random.split(key, 3)
        fan_in = cin * k * k
        bound = 1.0 / float(fan_in) ** 0.5
        w = jax.random.uniform(k1, (k, k, cin, cout), jnp.float32, -bound, bound)
        b = jax.random.uniform(k2, (cout,), jnp.float32, -bound, bound)
        gamma = jnp.ones((cout,), jnp.float32)   # nn.BatchNorm2d default weight
        beta = jnp.zeros((cout,), jnp.float32)   # nn.BatchNorm2d default bias
        params.append(dict(w=w, b=b, gamma=gamma, beta=beta, stride=s, pad=p))
    return params


def prepare_discriminator(params, layers_cfg, batch, h, w):
    """Builds the packed kernel operands, scratch shapes and the fused pallas_call."""
    operands, meta, scratch_shapes = [], [], []
    n = len(layers_cfg)
    for i, (pr, (cin, cout, k, s, p)) in enumerate(zip(params, layers_cfg)):
        assert k == 3 and p == 1, "kernel specialized to 3x3 / pad-1 convs"
        oh = (h + 2 * p - k) // s + 1
        ow = (w + 2 * p - k) // s + 1
        assert w * cin <= LANES and ow * cout <= LANES, \
            "row-packed layout needs W*C <= 128 lanes at these toy shapes"
        wpack = _pack_conv_weights(np.asarray(pr['w']), cin, cout, w, ow, s)
        bias = _pack_per_channel(np.asarray(pr['b']), cout, ow)
        operands += [wpack, bias]
        is_bn = i < n - 1
        if is_bn:
            operands += [_channel_pool_matrix(cout, ow),
                         _pack_per_channel(np.asarray(pr['gamma']), cout, ow),
                         _pack_per_channel(np.asarray(pr['beta']), cout, ow)]
            scratch_shapes.append(pltpu.VMEM((batch * (oh + 2), LANES), jnp.float32))
        meta.append(dict(B=batch, hp=h + 2, oh=oh, ow=ow, stride=s, bn=is_bn))
        h, w = oh, ow
    out_info = dict(oh=h, ow=w, cout=layers_cfg[-1][1])

    n_in = 1 + len(operands)
    fused = pl.pallas_call(
        _make_fused_kernel(meta),
        out_shape=jax.ShapeDtypeStruct((batch * h, LANES), jnp.float32),
        in_specs=[pl.BlockSpec(memory_space=pltpu.MemorySpace.VMEM)] * n_in,
        out_specs=pl.BlockSpec(memory_space=pltpu.MemorySpace.VMEM),
        scratch_shapes=scratch_shapes,
        compiler_params=pltpu.CompilerParams(vmem_limit_bytes=16 * 1024 * 1024),
    )
    return fused, operands, out_info


def discriminator_forward(x_nchw, fused, operands, out_info):
    bsz, cin, h, w = x_nchw.shape
    # Row-packed layout: one image row per sublane, W*C channels packed into lanes,
    # one zero padding row above/below each image (conv pad=1 in H), lanes padded to 128.
    x_rows = jnp.transpose(x_nchw, (0, 2, 3, 1)).reshape(bsz, h, w * cin)
    x_rows = jnp.pad(x_rows, ((0, 0), (1, 1), (0, LANES - w * cin)))
    x_in = x_rows.reshape(bsz * (h + 2), LANES)
    out = fused(x_in, *operands)                        # lane-dense (B*OH, 128) slab
    oh, ow, cout = out_info['oh'], out_info['ow'], out_info['cout']
    y = out[:, :ow * cout].reshape(bsz, oh, ow, cout)
    y = jnp.transpose(y, (0, 3, 1, 2))                  # NCHW, then .view(B, -1)
    return y.reshape(bsz, -1)


# ---------------- pure-JAX reference (correctness sanity check) ----------------

def reference_forward(x_nchw, params):
    x = jnp.transpose(x_nchw, (0, 2, 3, 1))
    n = len(params)
    for i, pr in enumerate(params):
        x = jax.lax.conv_general_dilated(
            x, pr['w'], window_strides=(pr['stride'], pr['stride']),
            padding=[(pr['pad'], pr['pad'])] * 2,
            dimension_numbers=('NHWC', 'HWIO', 'NHWC')) + pr['b']
        if i < n - 1:
            x = jnp.where(x >= 0, x, LEAKY_SLOPE * x)
            mean = jnp.mean(x, axis=(0, 1, 2), keepdims=True)
            var = jnp.mean((x - mean) ** 2, axis=(0, 1, 2), keepdims=True)
            x = pr['gamma'] * (x - mean) * jax.lax.rsqrt(var + BN_EPS) + pr['beta']
        else:
            x = jax.nn.sigmoid(x)
    x = jnp.transpose(x, (0, 3, 1, 2))
    return x.reshape(x.shape[0], -1)


if __name__ == "__main__":
    layers_cfg = CONFIG['CycleGAN']['Discriminator']['layers']
    key = jax.random.PRNGKey(0)
    key, pkey, xkey = jax.random.split(key, 3)
    params = init_params(pkey, layers_cfg)

    B, C, H, W = 2, layers_cfg[0][0], 16, 16
    x = jax.random.normal(xkey, (B, C, H, W), jnp.float32)

    fused, operands, out_info = prepare_discriminator(params, layers_cfg, B, H, W)
    fwd = jax.jit(lambda xx: discriminator_forward(xx, fused, operands, out_info))
    out = fwd(x)
    jax.block_until_ready(out)

    assert out.shape == (B, out_info['cout'] * out_info['oh'] * out_info['ow']), out.shape
    assert bool(jnp.all(jnp.isfinite(out)))
    assert bool(jnp.all((out >= 0.0) & (out <= 1.0)))      # sigmoid output range

    ref = reference_forward(x, params)
    max_err = float(jnp.max(jnp.abs(out - ref)))
    assert max_err < 5e-2, max_err                         # bf16 MXU convs vs f32 ref

    print("KERNEL_OK")
</pallas_src>

<mosaic_0001>
module attributes {stable_mosaic.version = 11 : i64} {
  func.func @kernel(%arg0: memref<36x128xf32, #tpu.memory_space<vmem>>, %arg1: memref<3x128x128xbf16, #tpu.memory_space<vmem>>, %arg2: memref<1x128xf32, #tpu.memory_space<vmem>>, %arg3: memref<128x128xf32, #tpu.memory_space<vmem>>, %arg4: memref<1x128xf32, #tpu.memory_space<vmem>>, %arg5: memref<1x128xf32, #tpu.memory_space<vmem>>, %arg6: memref<3x128x128xbf16, #tpu.memory_space<vmem>>, %arg7: memref<1x128xf32, #tpu.memory_space<vmem>>, %arg8: memref<128x128xf32, #tpu.memory_space<vmem>>, %arg9: memref<1x128xf32, #tpu.memory_space<vmem>>, %arg10: memref<1x128xf32, #tpu.memory_space<vmem>>, %arg11: memref<3x128x128xbf16, #tpu.memory_space<vmem>>, %arg12: memref<1x128xf32, #tpu.memory_space<vmem>>, %arg13: memref<8x128xf32, #tpu.memory_space<vmem>>, %arg14: memref<20x128xf32, #tpu.memory_space<vmem>>, %arg15: memref<12x128xf32, #tpu.memory_space<vmem>>) attributes {dimension_semantics = [], scalar_prefetch = 0 : i64, scratch_operands = 2 : i64, tpu.core_type = #tpu.core_type<tc>} {
    %cst = arith.constant 0.000000e+00 : f32
    %0 = vector.broadcast %cst : f32 to vector<20x128xf32>
    %c0 = arith.constant 0 : index
    %c0_0 = arith.constant 0 : index
    %1 = vector.load %arg14[%c0, %c0_0] : memref<20x128xf32, #tpu.memory_space<vmem>>, vector<20x128xf32>
    tpu.vector_store %arg14[%c0, %c0_0], %0 {strides = array<i32>} : memref<20x128xf32, #tpu.memory_space<vmem>>, vector<20x128xf32>,
    %cst_1 = arith.constant 0.000000e+00 : f32
    %2 = vector.broadcast %cst_1 : f32 to vector<12x128xf32>
    %c0_2 = arith.constant 0 : index
    %c0_3 = arith.constant 0 : index
    %3 = vector.load %arg15[%c0_2, %c0_3] : memref<12x128xf32, #tpu.memory_space<vmem>>, vector<12x128xf32>
    tpu.vector_store %arg15[%c0_2, %c0_3], %2 {strides = array<i32>} : memref<12x128xf32, #tpu.memory_space<vmem>>, vector<12x128xf32>,
    %c0_4 = arith.constant 0 : index
    %c0_5 = arith.constant 0 : index
    %4 = tpu.strided_load %arg0[%c0_4, %c0_5] {strides = array<i32: 2, 1>} : memref<36x128xf32, #tpu.memory_space<vmem>>, vector<8x128xf32>
    %c18 = arith.constant 18 : index
    %c0_6 = arith.constant 0 : index
    %5 = tpu.strided_load %arg0[%c18, %c0_6] {strides = array<i32: 2, 1>} : memref<36x128xf32, #tpu.memory_space<vmem>>, vector<8x128xf32>
    %6 = tpu.concatenate %4, %5 in 0 : vector<8x128xf32>, vector<8x128xf32> -> vector<16x128xf32>
    %7 = arith.truncf %6 : vector<16x128xf32> to vector<16x128xbf16>
    %c0_7 = arith.constant 0 : index
    %c0_8 = arith.constant 0 : index
    %c0_9 = arith.constant 0 : index
    %8 = vector.load %arg1[%c0_7, %c0_8, %c0_9] : memref<3x128x128xbf16, #tpu.memory_space<vmem>>, vector<1x128x128xbf16>
    %9 = vector.shape_cast %8 : vector<1x128x128xbf16> to vector<128x128xbf16>
    %cst_10 = arith.constant dense<0.000000e+00> : vector<16x128xf32>
    %10 = tpu.matmul %7, %9, %cst_10 {dimension_numbers = #tpu.dot_dimension_numbers<[1], [0], [0], [1], [0, 0, 1, 1], [], []>} : vector<16x128xbf16>, vector<128x128xbf16>, vector<16x128xf32> -> vector<16x128xf32>
    %c1 = arith.constant 1 : index
    %c0_11 = arith.constant 0 : index
    %11 = tpu.strided_load %arg0[%c1, %c0_11] {strides = array<i32: 2, 1>} : memref<36x128xf32, #tpu.memory_space<vmem>>, vector<8x128xf32>
    %c19 = arith.constant 19 : index
    %c0_12 = arith.constant 0 : index
    %12 = tpu.strided_load %arg0[%c19, %c0_12] {strides = array<i32: 2, 1>} : memref<36x128xf32, #tpu.memory_space<vmem>>, vector<8x128xf32>
    %13 = tpu.concatenate %11, %12 in 0 : vector<8x128xf32>, vector<8x128xf32> -> vector<16x128xf32>
    %14 = arith.truncf %13 : vector<16x128xf32> to vector<16x128xbf16>
    %c1_13 = arith.constant 1 : index
    %c0_14 = arith.constant 0 : index
    %c0_15 = arith.constant 0 : index
    %15 = vector.load %arg1[%c1_13, %c0_14, %c0_15] : memref<3x128x128xbf16, #tpu.memory_space<vmem>>, vector<1x128x128xbf16>
    %16 = vector.shape_cast %15 : vector<1x128x128xbf16> to vector<128x128xbf16>
    %cst_16 = arith.constant dense<0.000000e+00> : vector<16x128xf32>
    %17 = tpu.matmul %14, %16, %cst_16 {dimension_numbers = #tpu.dot_dimension_numbers<[1], [0], [0], [1], [0, 0, 1, 1], [], []>} : vector<16x128xbf16>, vector<128x128xbf16>, vector<16x128xf32> -> vector<16x128xf32>
    %18 = arith.addf %10, %17 : vector<16x128xf32>
    %c2 = arith.constant 2 : index
    %c0_17 = arith.constant 0 : index
    %19 = tpu.strided_load %arg0[%c2, %c0_17] {strides = array<i32: 2, 1>} : memref<36x128xf32, #tpu.memory_space<vmem>>, vector<8x128xf32>
    %c20 = arith.constant 20 : index
    %c0_18 = arith.constant 0 : index
    %20 = tpu.strided_load %arg0[%c20, %c0_18] {strides = array<i32: 2, 1>} : memref<36x128xf32, #tpu.memory_space<vmem>>, vector<8x128xf32>
    %21 = tpu.concatenate %19, %20 in 0 : vector<8x128xf32>, vector<8x128xf32> -> vector<16x128xf32>
    %22 = arith.truncf %21 : vector<16x128xf32> to vector<16x128xbf16>
    %c2_19 = arith.constant 2 : index
    %c0_20 = arith.constant 0 : index
    %c0_21 = arith.constant 0 : index
    %23 = vector.load %arg1[%c2_19, %c0_20, %c0_21] : memref<3x128x128xbf16, #tpu.memory_space<vmem>>, vector<1x128x128xbf16>
    %24 = vector.shape_cast %23 : vector<1x128x128xbf16> to vector<128x128xbf16>
    %cst_22 = arith.constant dense<0.000000e+00> : vector<16x128xf32>
    %25 = tpu.matmul %22, %24, %cst_22 {dimension_numbers = #tpu.dot_dimension_numbers<[1], [0], [0], [1], [0, 0, 1, 1], [], []>} : vector<16x128xbf16>, vector<128x128xbf16>, vector<16x128xf32> -> vector<16x128xf32>
    %26 = arith.addf %18, %25 : vector<16x128xf32>
    %c0_23 = arith.constant 0 : index
    %c0_24 = arith.constant 0 : index
    %27 = vector.load %arg2[%c0_23, %c0_24] : memref<1x128xf32, #tpu.memory_space<vmem>>, vector<1x128xf32>
    %28 = vector.broadcast %27 : vector<1x128xf32> to vector<16x128xf32>
    %29 = arith.addf %26, %28 : vector<16x128xf32>
    %cst_25 = arith.constant 0.00999999977 : f32
    %30 = vector.broadcast %cst_25 : f32 to vector<16x128xf32>
    %31 = arith.mulf %30, %29 : vector<16x128xf32>
    %32 = arith.maximumf %29, %31 : vector<16x128xf32>
    %cst_26 = arith.constant dense<0.000000e+00> : vector<128xf32>
    %33 = vector.multi_reduction <add>, %32, %cst_26 [0] : vector<16x128xf32> to vector<128xf32>
    %34 = vector.shape_cast %33 : vector<128xf32> to vector<1x128xf32>
    %35 = arith.mulf %32, %32 : vector<16x128xf32>
    %cst_27 = arith.constant dense<0.000000e+00> : vector<128xf32>
    %36 = vector.multi_reduction <add>, %35, %cst_27 [0] : vector<16x128xf32> to vector<128xf32>
    %37 = vector.shape_cast %36 : vector<128xf32> to vector<1x128xf32>
    %c0_28 = arith.constant 0 : index
    %c0_29 = arith.constant 0 : index
    %38 = vector.load %arg3[%c0_28, %c0_29] : memref<128x128xf32, #tpu.memory_space<vmem>>, vector<128x128xf32>
    %cst_30 = arith.constant dense<0.000000e+00> : vector<1x128xf32>
    %39 = tpu.matmul %34, %38, %cst_30 {dimension_numbers = #tpu.dot_dimension_numbers<[1], [0], [0], [1], [0, 0, 1, 1], [], []>} : vector<1x128xf32>, vector<128x128xf32>, vector<1x128xf32> -> vector<1x128xf32>
    %cst_31 = arith.constant 7.812500e-03 : f32
    %40 = vector.broadcast %cst_31 : f32 to vector<1x128xf32>
    %41 = arith.mulf %39, %40 : vector<1x128xf32>
    %c0_32 = arith.constant 0 : index
    %c0_33 = arith.constant 0 : index
    %42 = vector.load %arg3[%c0_32, %c0_33] : memref<128x128xf32, #tpu.memory_space<vmem>>, vector<128x128xf32>
    %cst_34 = arith.constant dense<0.000000e+00> : vector<1x128xf32>
    %43 = tpu.matmul %37, %42, %cst_34 {dimension_numbers = #tpu.dot_dimension_numbers<[1], [0], [0], [1], [0, 0, 1, 1], [], []>} : vector<1x128xf32>, vector<128x128xf32>, vector<1x128xf32> -> vector<1x128xf32>
    %cst_35 = arith.constant 7.812500e-03 : f32
    %44 = vector.broadcast %cst_35 : f32 to vector<1x128xf32>
    %45 = arith.mulf %43, %44 : vector<1x128xf32>
    %46 = arith.mulf %41, %41 : vector<1x128xf32>
    %47 = arith.subf %45, %46 : vector<1x128xf32>
    %cst_36 = arith.constant 0.000000e+00 : f32
    %48 = vector.broadcast %cst_36 : f32 to vector<1x128xf32>
    %49 = arith.maximumf %47, %48 : vector<1x128xf32>
    %c0_37 = arith.constant 0 : index
    %c0_38 = arith.constant 0 : index
    %50 = vector.load %arg4[%c0_37, %c0_38] : memref<1x128xf32, #tpu.memory_space<vmem>>, vector<1x128xf32>
    %cst_39 = arith.constant 9.99999974E-6 : f32
    %51 = vector.broadcast %cst_39 : f32 to vector<1x128xf32>
    %52 = arith.addf %49, %51 : vector<1x128xf32>
    %53 = math.rsqrt %52 : vector<1x128xf32>
    %54 = arith.mulf %50, %53 : vector<1x128xf32>
    %c0_40 = arith.constant 0 : index
    %c0_41 = arith.constant 0 : index
    %55 = vector.load %arg5[%c0_40, %c0_41] : memref<1x128xf32, #tpu.memory_space<vmem>>, vector<1x128xf32>
    %56 = arith.mulf %41, %54 : vector<1x128xf32>
    %57 = arith.subf %55, %56 : vector<1x128xf32>
    %58 = vector.broadcast %54 : vector<1x128xf32> to vector<16x128xf32>
    %59 = arith.mulf %32, %58 : vector<16x128xf32>
    %60 = vector.broadcast %57 : vector<1x128xf32> to vector<16x128xf32>
    %61 = arith.addf %59, %60 : vector<16x128xf32>
    %62 = vector.extract_strided_slice %61 {offsets = [0, 0], sizes = [8, 128], strides = [1, 1]} : vector<16x128xf32> to vector<8x128xf32>
    %c1_42 = arith.constant 1 : index
    %c0_43 = arith.constant 0 : index
    %63 = vector.load %arg14[%c1_42, %c0_43] : memref<20x128xf32, #tpu.memory_space<vmem>>, vector<8x128xf32>
    tpu.vector_store %arg14[%c1_42, %c0_43], %62 {strides = array<i32>} : memref<20x128xf32, #tpu.memory_space<vmem>>, vector<8x128xf32>,
    %64 = vector.extract_strided_slice %61 {offsets = [8, 0], sizes = [8, 128], strides = [1, 1]} : vector<16x128xf32> to vector<8x128xf32>
    %c11 = arith.constant 11 : index
    %c0_44 = arith.constant 0 : index
    %65 = vector.load %arg14[%c11, %c0_44] : memref<20x128xf32, #tpu.memory_space<vmem>>, vector<8x128xf32>
    tpu.vector_store %arg14[%c11, %c0_44], %64 {strides = array<i32>} : memref<20x128xf32, #tpu.memory_space<vmem>>, vector<8x128xf32>,
    %c0_45 = arith.constant 0 : index
    %c0_46 = arith.constant 0 : index
    %66 = tpu.strided_load %arg14[%c0_45, %c0_46] {strides = array<i32: 2, 1>} : memref<20x128xf32, #tpu.memory_space<vmem>>, vector<4x128xf32>
    %c10 = arith.constant 10 : index
    %c0_47 = arith.constant 0 : index
    %67 = tpu.strided_load %arg14[%c10, %c0_47] {strides = array<i32: 2, 1>} : memref<20x128xf32, #tpu.memory_space<vmem>>, vector<4x128xf32>
    %68 = tpu.concatenate %66, %67 in 0 : vector<4x128xf32>, vector<4x128xf32> -> vector<8x128xf32>
    %69 = arith.truncf %68 : vector<8x128xf32> to vector<8x128xbf16>
    %c0_48 = arith.constant 0 : index
    %c0_49 = arith.constant 0 : index
    %c0_50 = arith.constant 0 : index
    %70 = vector.load %arg6[%c0_48, %c0_49, %c0_50] : memref<3x128x128xbf16, #tpu.memory_space<vmem>>, vector<1x128x128xbf16>
    %71 = vector.shape_cast %70 : vector<1x128x128xbf16> to vector<128x128xbf16>
    %cst_51 = arith.constant dense<0.000000e+00> : vector<8x128xf32>
    %72 = tpu.matmul %69, %71, %cst_51 {dimension_numbers = #tpu.dot_dimension_numbers<[1], [0], [0], [1], [0, 0, 1, 1], [], []>} : vector<8x128xbf16>, vector<128x128xbf16>, vector<8x128xf32> -> vector<8x128xf32>
    %c1_52 = arith.constant 1 : index
    %c0_53 = arith.constant 0 : index
    %73 = tpu.strided_load %arg14[%c1_52, %c0_53] {strides = array<i32: 2, 1>} : memref<20x128xf32, #tpu.memory_space<vmem>>, vector<4x128xf32>
    %c11_54 = arith.constant 11 : index
    %c0_55 = arith.constant 0 : index
    %74 = tpu.strided_load %arg14[%c11_54, %c0_55] {strides = array<i32: 2, 1>} : memref<20x128xf32, #tpu.memory_space<vmem>>, vector<4x128xf32>
    %75 = tpu.concatenate %73, %74 in 0 : vector<4x128xf32>, vector<4x128xf32> -> vector<8x128xf32>
    %76 = arith.truncf %75 : vector<8x128xf32> to vector<8x128xbf16>
    %c1_56 = arith.constant 1 : index
    %c0_57 = arith.constant 0 : index
    %c0_58 = arith.constant 0 : index
    %77 = vector.load %arg6[%c1_56, %c0_57, %c0_58] : memref<3x128x128xbf16, #tpu.memory_space<vmem>>, vector<1x128x128xbf16>
    %78 = vector.shape_cast %77 : vector<1x128x128xbf16> to vector<128x128xbf16>
    %cst_59 = arith.constant dense<0.000000e+00> : vector<8x128xf32>
    %79 = tpu.matmul %76, %78, %cst_59 {dimension_numbers = #tpu.dot_dimension_numbers<[1], [0], [0], [1], [0, 0, 1, 1], [], []>} : vector<8x128xbf16>, vector<128x128xbf16>, vector<8x128xf32> -> vector<8x128xf32>
    %80 = arith.addf %72, %79 : vector<8x128xf32>
    %c2_60 = arith.constant 2 : index
    %c0_61 = arith.constant 0 : index
    %81 = tpu.strided_load %arg14[%c2_60, %c0_61] {strides = array<i32: 2, 1>} : memref<20x128xf32, #tpu.memory_space<vmem>>, vector<4x128xf32>
    %c12 = arith.constant 12 : index
    %c0_62 = arith.constant 0 : index
    %82 = tpu.strided_load %arg14[%c12, %c0_62] {strides = array<i32: 2, 1>} : memref<20x128xf32, #tpu.memory_space<vmem>>, vector<4x128xf32>
    %83 = tpu.concatenate %81, %82 in 0 : vector<4x128xf32>, vector<4x128xf32> -> vector<8x128xf32>
    %84 = arith.truncf %83 : vector<8x128xf32> to vector<8x128xbf16>
    %c2_63 = arith.constant 2 : index
    %c0_64 = arith.constant 0 : index
    %c0_65 = arith.constant 0 : index
    %85 = vector.load %arg6[%c2_63, %c0_64, %c0_65] : memref<3x128x128xbf16, #tpu.memory_space<vmem>>, vector<1x128x128xbf16>
    %86 = vector.shape_cast %85 : vector<1x128x128xbf16> to vector<128x128xbf16>
    %cst_66 = arith.constant dense<0.000000e+00> : vector<8x128xf32>
    %87 = tpu.matmul %84, %86, %cst_66 {dimension_numbers = #tpu.dot_dimension_numbers<[1], [0], [0], [1], [0, 0, 1, 1], [], []>} : vector<8x128xbf16>, vector<128x128xbf16>, vector<8x128xf32> -> vector<8x128xf32>
    %88 = arith.addf %80, %87 : vector<8x128xf32>
    %c0_67 = arith.constant 0 : index
    %c0_68 = arith.constant 0 : index
    %89 = vector.load %arg7[%c0_67, %c0_68] : memref<1x128xf32, #tpu.memory_space<vmem>>, vector<1x128xf32>
    %90 = vector.broadcast %89 : vector<1x128xf32> to vector<8x128xf32>
    %91 = arith.addf %88, %90 : vector<8x128xf32>
    %cst_69 = arith.constant 0.00999999977 : f32
    %92 = vector.broadcast %cst_69 : f32 to vector<8x128xf32>
    %93 = arith.mulf %92, %91 : vector<8x128xf32>
    %94 = arith.maximumf %91, %93 : vector<8x128xf32>
    %cst_70 = arith.constant dense<0.000000e+00> : vector<128xf32>
    %95 = vector.multi_reduction <add>, %94, %cst_70 [0] : vector<8x128xf32> to vector<128xf32>
    %96 = vector.shape_cast %95 : vector<128xf32> to vector<1x128xf32>
    %97 = arith.mulf %94, %94 : vector<8x128xf32>
    %cst_71 = arith.constant dense<0.000000e+00> : vector<128xf32>
    %98 = vector.multi_reduction <add>, %97, %cst_71 [0] : vector<8x128xf32> to vector<128xf32>
    %99 = vector.shape_cast %98 : vector<128xf32> to vector<1x128xf32>
    %c0_72 = arith.constant 0 : index
    %c0_73 = arith.constant 0 : index
    %100 = vector.load %arg8[%c0_72, %c0_73] : memref<128x128xf32, #tpu.memory_space<vmem>>, vector<128x128xf32>
    %cst_74 = arith.constant dense<0.000000e+00> : vector<1x128xf32>
    %101 = tpu.matmul %96, %100, %cst_74 {dimension_numbers = #tpu.dot_dimension_numbers<[1], [0], [0], [1], [0, 0, 1, 1], [], []>} : vector<1x128xf32>, vector<128x128xf32>, vector<1x128xf32> -> vector<1x128xf32>
    %cst_75 = arith.constant 3.125000e-02 : f32
    %102 = vector.broadcast %cst_75 : f32 to vector<1x128xf32>
    %103 = arith.mulf %101, %102 : vector<1x128xf32>
    %c0_76 = arith.constant 0 : index
    %c0_77 = arith.constant 0 : index
    %104 = vector.load %arg8[%c0_76, %c0_77] : memref<128x128xf32, #tpu.memory_space<vmem>>, vector<128x128xf32>
    %cst_78 = arith.constant dense<0.000000e+00> : vector<1x128xf32>
    %105 = tpu.matmul %99, %104, %cst_78 {dimension_numbers = #tpu.dot_dimension_numbers<[1], [0], [0], [1], [0, 0, 1, 1], [], []>} : vector<1x128xf32>, vector<128x128xf32>, vector<1x128xf32> -> vector<1x128xf32>
    %cst_79 = arith.constant 3.125000e-02 : f32
    %106 = vector.broadcast %cst_79 : f32 to vector<1x128xf32>
    %107 = arith.mulf %105, %106 : vector<1x128xf32>
    %108 = arith.mulf %103, %103 : vector<1x128xf32>
    %109 = arith.subf %107, %108 : vector<1x128xf32>
    %cst_80 = arith.constant 0.000000e+00 : f32
    %110 = vector.broadcast %cst_80 : f32 to vector<1x128xf32>
    %111 = arith.maximumf %109, %110 : vector<1x128xf32>
    %c0_81 = arith.constant 0 : index
    %c0_82 = arith.constant 0 : index
    %112 = vector.load %arg9[%c0_81, %c0_82] : memref<1x128xf32, #tpu.memory_space<vmem>>, vector<1x128xf32>
    %cst_83 = arith.constant 9.99999974E-6 : f32
    %113 = vector.broadcast %cst_83 : f32 to vector<1x128xf32>
    %114 = arith.addf %111, %113 : vector<1x128xf32>
    %115 = math.rsqrt %114 : vector<1x128xf32>
    %116 = arith.mulf %112, %115 : vector<1x128xf32>
    %c0_84 = arith.constant 0 : index
    %c0_85 = arith.constant 0 : index
    %117 = vector.load %arg10[%c0_84, %c0_85] : memref<1x128xf32, #tpu.memory_space<vmem>>, vector<1x128xf32>
    %118 = arith.mulf %103, %116 : vector<1x128xf32>
    %119 = arith.subf %117, %118 : vector<1x128xf32>
    %120 = vector.broadcast %116 : vector<1x128xf32> to vector<8x128xf32>
    %121 = arith.mulf %94, %120 : vector<8x128xf32>
    %122 = vector.broadcast %119 : vector<1x128xf32> to vector<8x128xf32>
    %123 = arith.addf %121, %122 : vector<8x128xf32>
    %124 = vector.extract_strided_slice %123 {offsets = [0, 0], sizes = [4, 128], strides = [1, 1]} : vector<8x128xf32> to vector<4x128xf32>
    %c1_86 = arith.constant 1 : index
    %c0_87 = arith.constant 0 : index
    %125 = vector.load %arg15[%c1_86, %c0_87] : memref<12x128xf32, #tpu.memory_space<vmem>>, vector<4x128xf32>
    tpu.vector_store %arg15[%c1_86, %c0_87], %124 {strides = array<i32>} : memref<12x128xf32, #tpu.memory_space<vmem>>, vector<4x128xf32>,
    %126 = vector.extract_strided_slice %123 {offsets = [4, 0], sizes = [4, 128], strides = [1, 1]} : vector<8x128xf32> to vector<4x128xf32>
    %c7 = arith.constant 7 : index
    %c0_88 = arith.constant 0 : index
    %127 = vector.load %arg15[%c7, %c0_88] : memref<12x128xf32, #tpu.memory_space<vmem>>, vector<4x128xf32>
    tpu.vector_store %arg15[%c7, %c0_88], %126 {strides = array<i32>} : memref<12x128xf32, #tpu.memory_space<vmem>>, vector<4x128xf32>,
    %c0_89 = arith.constant 0 : index
    %c0_90 = arith.constant 0 : index
    %128 = vector.load %arg15[%c0_89, %c0_90] : memref<12x128xf32, #tpu.memory_space<vmem>>, vector<4x128xf32>
    %c6 = arith.constant 6 : index
    %c0_91 = arith.constant 0 : index
    %129 = vector.load %arg15[%c6, %c0_91] : memref<12x128xf32, #tpu.memory_space<vmem>>, vector<4x128xf32>
    %130 = tpu.concatenate %128, %129 in 0 : vector<4x128xf32>, vector<4x128xf32> -> vector<8x128xf32>
    %131 = arith.truncf %130 : vector<8x128xf32> to vector<8x128xbf16>
    %c0_92 = arith.constant 0 : index
    %c0_93 = arith.constant 0 : index
    %c0_94 = arith.constant 0 : index
    %132 = vector.load %arg11[%c0_92, %c0_93, %c0_94] : memref<3x128x128xbf16, #tpu.memory_space<vmem>>, vector<1x128x128xbf16>
    %133 = vector.shape_cast %132 : vector<1x128x128xbf16> to vector<128x128xbf16>
    %cst_95 = arith.constant dense<0.000000e+00> : vector<8x128xf32>
    %134 = tpu.matmul %131, %133, %cst_95 {dimension_numbers = #tpu.dot_dimension_numbers<[1], [0], [0], [1], [0, 0, 1, 1], [], []>} : vector<8x128xbf16>, vector<128x128xbf16>, vector<8x128xf32> -> vector<8x128xf32>
    %c1_96 = arith.constant 1 : index
    %c0_97 = arith.constant 0 : index
    %135 = vector.load %arg15[%c1_96, %c0_97] : memref<12x128xf32, #tpu.memory_space<vmem>>, vector<4x128xf32>
    %c7_98 = arith.constant 7 : index
    %c0_99 = arith.constant 0 : index
    %136 = vector.load %arg15[%c7_98, %c0_99] : memref<12x128xf32, #tpu.memory_space<vmem>>, vector<4x128xf32>
    %137 = tpu.concatenate %135, %136 in 0 : vector<4x128xf32>, vector<4x128xf32> -> vector<8x128xf32>
    %138 = arith.truncf %137 : vector<8x128xf32> to vector<8x128xbf16>
    %c1_100 = arith.constant 1 : index
    %c0_101 = arith.constant 0 : index
    %c0_102 = arith.constant 0 : index
    %139 = vector.load %arg11[%c1_100, %c0_101, %c0_102] : memref<3x128x128xbf16, #tpu.memory_space<vmem>>, vector<1x128x128xbf16>
    %140 = vector.shape_cast %139 : vector<1x128x128xbf16> to vector<128x128xbf16>
    %cst_103 = arith.constant dense<0.000000e+00> : vector<8x128xf32>
    %141 = tpu.matmul %138, %140, %cst_103 {dimension_numbers = #tpu.dot_dimension_numbers<[1], [0], [0], [1], [0, 0, 1, 1], [], []>} : vector<8x128xbf16>, vector<128x128xbf16>, vector<8x128xf32> -> vector<8x128xf32>
    %142 = arith.addf %134, %141 : vector<8x128xf32>
    %c2_104 = arith.constant 2 : index
    %c0_105 = arith.constant 0 : index
    %143 = vector.load %arg15[%c2_104, %c0_105] : memref<12x128xf32, #tpu.memory_space<vmem>>, vector<4x128xf32>
    %c8 = arith.constant 8 : index
    %c0_106 = arith.constant 0 : index
    %144 = vector.load %arg15[%c8, %c0_106] : memref<12x128xf32, #tpu.memory_space<vmem>>, vector<4x128xf32>
    %145 = tpu.concatenate %143, %144 in 0 : vector<4x128xf32>, vector<4x128xf32> -> vector<8x128xf32>
    %146 = arith.truncf %145 : vector<8x128xf32> to vector<8x128xbf16>
    %c2_107 = arith.constant 2 : index
    %c0_108 = arith.constant 0 : index
    %c0_109 = arith.constant 0 : index
    %147 = vector.load %arg11[%c2_107, %c0_108, %c0_109] : memref<3x128x128xbf16, #tpu.memory_space<vmem>>, vector<1x128x128xbf16>
    %148 = vector.shape_cast %147 : vector<1x128x128xbf16> to vector<128x128xbf16>
    %cst_110 = arith.constant dense<0.000000e+00> : vector<8x128xf32>
    %149 = tpu.matmul %146, %148, %cst_110 {dimension_numbers = #tpu.dot_dimension_numbers<[1], [0], [0], [1], [0, 0, 1, 1], [], []>} : vector<8x128xbf16>, vector<128x128xbf16>, vector<8x128xf32> -> vector<8x128xf32>
    %150 = arith.addf %142, %149 : vector<8x128xf32>
    %c0_111 = arith.constant 0 : index
    %c0_112 = arith.constant 0 : index
    %151 = vector.load %arg12[%c0_111, %c0_112] : memref<1x128xf32, #tpu.memory_space<vmem>>, vector<1x128xf32>
    %152 = vector.broadcast %151 : vector<1x128xf32> to vector<8x128xf32>
    %153 = arith.addf %150, %152 : vector<8x128xf32>
    %cst_113 = arith.constant 5.000000e-01 : f32
    %154 = vector.broadcast %cst_113 : f32 to vector<8x128xf32>
    %155 = arith.mulf %154, %153 : vector<8x128xf32>
    %156 = math.tanh %155 : vector<8x128xf32>
    %cst_114 = arith.constant 1.000000e+00 : f32
    %157 = vector.broadcast %cst_114 : f32 to vector<8x128xf32>
    %158 = arith.addf %156, %157 : vector<8x128xf32>
    %cst_115 = arith.constant 5.000000e-01 : f32
    %159 = vector.broadcast %cst_115 : f32 to vector<8x128xf32>
    %160 = arith.mulf %159, %158 : vector<8x128xf32>
    %c0_116 = arith.constant 0 : index
    %c0_117 = arith.constant 0 : index
    %161 = vector.load %arg13[%c0_116, %c0_117] : memref<8x128xf32, #tpu.memory_space<vmem>>, vector<8x128xf32>
    tpu.vector_store %arg13[%c0_116, %c0_117], %160 {strides = array<i32>} : memref<8x128xf32, #tpu.memory_space<vmem>>, vector<8x128xf32>,
    return
  }
}

</mosaic_0001>

<bundles_post_ra>
// kernel: _lambda_.1
= control target key start
LH: loop header
LB: loop body
LE: loop exit
PB: predicated region body
PF: predicated region fallthrough
CT: control target
= control target key end

     0   :  { %18 = vsyncpa [#allocation5], 0  ;;  %s1978_s0 = inlined_call_operand.vmem [shape: f32[36,128], index: 0, kind: input, shape index: {}]   ;;  %s1979_s1 = inlined_call_operand.vmem [shape: bf16[3,128,128], index: 1, kind: input, shape index: {}]   ;;  %s1980_s2 = inlined_call_operand.vmem [shape: f32[1,128], index: 2, kind: input, shape index: {}]   ;;  %s1981_s3 = inlined_call_operand.hbm [shape: f32[128,128], index: 3, kind: input, shape index: {}]   ;;  %s1982_s4 = inlined_call_operand.vmem [shape: f32[1,128], index: 4, kind: input, shape index: {}, may-alias: {4,9}]   ;;  %s1983_s5 = inlined_call_operand.vmem [shape: f32[1,128], index: 5, kind: input, shape index: {}, may-alias: {5,10}]   ;;  %s1984_s6 = inlined_call_operand.vmem [shape: bf16[3,128,128], index: 6, kind: input, shape index: {}]   ;;  %s1985_s7 = inlined_call_operand.vmem [shape: f32[1,128], index: 7, kind: input, shape index: {}]   ;;  %s1986_s8 = inlined_call_operand.hbm [shape: f32[128,128], index: 8, kind: input, shape index: {}]   ;;  %s1987_s9 = inlined_call_operand.vmem [shape: f32[1,128], index: 9, kind: input, shape index: {}, may-alias: {4,9}]   ;;  %s1988_s10 = inlined_call_operand.vmem [shape: f32[1,128], index: 10, kind: input, shape index: {}, may-alias: {5,10}]   ;;  %s1989_s11 = inlined_call_operand.vmem [shape: bf16[3,128,128], index: 11, kind: input, shape index: {}]   ;;  %s1990_s12 = inlined_call_operand.vmem [shape: f32[1,128], index: 12, kind: input, shape index: {}]   ;;  %s1991_s13 = inlined_call_operand.vmem [shape: f32[8,128], index: 13, kind: output, shape index: {}]  }
   0x1   :  { %s30_s27 = sshll.u32 %s1981_s3, 4  ;;  %s31_s27 = int_to_ptr.hbm [resolvable:$true] %s30_s27 }
   0x2   :  { %19 = vsyncpa [#allocation7], 0  ;;  %s1614_s28 = smov [#allocation4]   ;;  %s51_s15 = sshll.u32 %s1986_s8, 4  ;;  %s52_s15 = int_to_ptr.hbm [resolvable:$true] %s51_s15 }
   0x3   :  { %s32_s29 = sshll.u32 %s1614_s28, 4  ;;  %s1615_s16 = smov 128   ;;  %s33_s29 = int_to_ptr.vmem [resolvable:$true] %s32_s29 }
   0x4   :  { %s1616_s17 = smov 8   ;;  %s1617_s18 = smov [#allocation6]  }
   0x5   :  { %38 = dma.hbm_to_vmem [thread:$0]  %s31_s27, 2048, %s33_s29, [#allocation5], %s1615_s16, %s1615_s16, %s1616_s17  }
   0x6   :  { %s53_s19 = sshll.u32 %s1617_s18, 4  ;;  %s54_s19 = int_to_ptr.vmem [resolvable:$true] %s53_s19 }
   0x7   :  { %59 = dma.hbm_to_vmem [thread:$0]  %s52_s15, 2048, %s54_s19, [#allocation7], %s1615_s16, %s1615_s16, %s1616_s17  }
   0x8   :  { %1610 = dma.done.wait [#allocation5], 2048  }
   0x9   :  { %1611 = vsyncadd [#allocation5], 4294965248 }
   0xa   :  { %1612 = dma.done.wait [#allocation7], 2048  }
   0xb   :  { %1613 = vsyncadd [#allocation7], 4294965248  ;;  %v1491_v0 = vld [vmem:[%s1979_s1 + $0x78] sm:$0xff]  ;;  %v1490_v2 = vld [vmem:[%s1979_s1 + $0x70] sm:$0xff]  ;;  %vm454_vm3 = vcmask 1043456  }
   0xc   :  { %v1499_v1 = vld [vmem:[%s1979_s1 + $0xb8] sm:$0xff]  ;;  %171 = vmatpush.bf16.msra.mxu1 %v1491_v0  ;;  %v1498_v3 = vld [vmem:[%s1979_s1 + $0xb0] sm:$0xff]  ;;  %v1489_v4 = vld [vmem:[%s1979_s1 + $0x68] sm:$0xff] }
   0xd   :  { %317 = vmatpush.bf16.msra.mxu2 %v1499_v1  ;;  %v1497_v5 = vld [vmem:[%s1979_s1 + $0xa8] sm:$0xff]  ;;  %v1488_v6 = vld [vmem:[%s1979_s1 + $0x60] sm:$0xff]  ;;  %v1487_v8 = vld [vmem:[%s1979_s1 + $0x58] sm:$0xff] }
   0xe   :  { %v1496_v7 = vld [vmem:[%s1979_s1 + $0xa0] sm:$0xff]  ;;  %v1495_v9 = vld [vmem:[%s1979_s1 + $0x98] sm:$0xff]  ;;  %v1486_v10 = vld [vmem:[%s1979_s1 + $0x50] sm:$0xff] }
   0xf   :  { %v1494_v11 = vld [vmem:[%s1979_s1 + $0x90] sm:$0xff]  ;;  %v1485_v12 = vld [vmem:[%s1979_s1 + $0x48] sm:$0xff]  ;;  %v1484_v14 = vld [vmem:[%s1979_s1 + $0x40] sm:$0xff] }
  0x10   :  { %172 = vmatpush.bf16.msra.mxu1 %v1490_v2  ;;  %v1493_v13 = vld [vmem:[%s1979_s1 + $0x88] sm:$0xff]  ;;  %v1483_v15 = vld [vmem:[%s1979_s1 + $0x38] sm:$0xff]  ;;  %v1492_v18 = vld [vmem:[%s1979_s1 + $0x80] sm:$0xff] }
  0x11   :  { %318 = vmatpush.bf16.msra.mxu2 %v1498_v3  ;;  %v1088_v16 = vld [vmem:[%s1978_s0 + $0x1] ss:$2 sm:$0xff]  ;;  %v1170_v19 = vld [vmem:[%s1978_s0 + $0x2] ss:$2 sm:$0xff]  ;;  %v1479_v26 = vld [vmem:[%s1979_s1 + $0x18] sm:$0xff] }
  0x12   :  { %v1089_v17 = vld [vmem:[%s1978_s0 + $0x13] ss:$2 sm:$0xff]  ;;  %v1171_v20 = vld [vmem:[%s1978_s0 + $0x14] ss:$2 sm:$0xff]  ;;  %v1481_v24 = vld [vmem:[%s1979_s1 + $0x28] sm:$0xff] }
  0x13   :  { %v105_v21 = vpack.c.bf16 %v1089_v17, %v1088_v16  ;;  %v251_v22 = vpack.c.bf16 %v1171_v20, %v1170_v19  ;;  %v1482_v23 = vld [vmem:[%s1979_s1 + $0x30] sm:$0xff]  ;;  %v1480_v25 = vld [vmem:[%s1979_s1 + $0x20] sm:$0xff]  ;;  %v1477_v28 = vld [vmem:[%s1979_s1 + $0x8] sm:$0xff] }
  0x14   :  { %173 = vmatpush.bf16.msra.mxu1 %v1489_v4  ;;  %v1478_v27 = vld [vmem:[%s1979_s1 + $0x10] sm:$0xff]  ;;  %v1476_v29 = vld [vmem:[%s1979_s1] sm:$0xff]  ;;  %v373_v34 = vld [vmem:[#allocation4 + $0x70] sm:$0xff] }
  0x15   :  { %319 = vmatpush.bf16.msra.mxu2 %v1497_v5  ;;  %v81_v30 = vld [vmem:[%s1978_s0] ss:$2 sm:$0xff]  ;;  %v372_v35 = vld [vmem:[#allocation4 + $0x68] sm:$0xff]  ;;  %v369_v38 = vld [vmem:[#allocation4 + $0x50] sm:$0xff] }
  0x16   :  { %v1087_v31 = vld [vmem:[%s1978_s0 + $0x12] ss:$2 sm:$0xff]  ;;  %v371_v36 = vld [vmem:[#allocation4 + $0x60] sm:$0xff] }
  0x17   :  { %v84_v32 = vpack.c.bf16 %v1087_v31, %v81_v30  ;;  %v374_v33 = vld [vmem:[#allocation4 + $0x78] sm:$0xff]  ;;  %v368_v39 = vld [vmem:[#allocation4 + $0x48] sm:$0xff]  ;;  %v367_v41 = vld [vmem:[#allocation4 + $0x40] sm:$0xff] }
  0x18   :  { %174 = vmatpush.bf16.msra.mxu1 %v1488_v6  ;;  %375 = vmatpush.msra.mxu3 %v374_v33  ;;  %v370_v37 = vld [vmem:[#allocation4 + $0x58] sm:$0xff]  ;;  %v365_v43 = vld [vmem:[#allocation4 + $0x30] sm:$0xff]  ;;  %v364_v44 = vld [vmem:[#allocation4 + $0x28] sm:$0xff] }
  0x19   :  { %320 = vmatpush.bf16.msra.mxu2 %v1496_v7  ;;  %396 = vmatpush.msra.mxu0 %v374_v33  ;;  %v366_v42 = vld [vmem:[#allocation4 + $0x38] sm:$0xff]  ;;  %v363_v45 = vld [vmem:[#allocation4 + $0x20] sm:$0xff]  ;;  %v361_v48 = vld [vmem:[#allocation4 + $0x10] sm:$0xff] }
  0x1a   :  { %376 = vmatpush.msra.mxu3 %v373_v34  ;;  %v362_v46 = vld [vmem:[#allocation4 + $0x18] sm:$0xff]  ;;  %v360_v49 = vld [vmem:[#allocation4 + $0x8] sm:$0xff]  ;;  %v359_v50 = vld [vmem:[#allocation4] sm:$0xff] }
  0x1b   :  { %397 = vmatpush.msra.mxu0 %v373_v34  ;;  %v1553_v55 = vld [vmem:[%s1980_s2] ss:$0 sm:$0xff]  ;;  %v1515_v19 = vld [vmem:[%s1984_s6 + $0x78] sm:$0xff] }
  0x1c   :  { %175 = vmatpush.bf16.msra.mxu1 %v1487_v8  ;;  %377 = vmatpush.msra.mxu3 %v372_v35  ;;  %v1507_v20 = vld [vmem:[%s1984_s6 + $0x38] sm:$0xff]  ;;  %v1512_v30 = vld [vmem:[%s1984_s6 + $0x60] sm:$0xff] }
  0x1d   :  { %321 = vmatpush.bf16.msra.mxu2 %v1495_v9  ;;  %398 = vmatpush.msra.mxu0 %v372_v35  ;;  %v1504_v31 = vld [vmem:[%s1984_s6 + $0x20] sm:$0xff] }
  0x1e   :  { %378 = vmatpush.msra.mxu3 %v371_v36 }
  0x1f   :  { %399 = vmatpush.msra.mxu0 %v371_v36  ;;  %v1511_v36 = vld [vmem:[%s1984_s6 + $0x58] sm:$0xff] }
  0x20   :  { %176 = vmatpush.bf16.msra.mxu1 %v1486_v10  ;;  %379 = vmatpush.msra.mxu3 %v370_v37 }
  0x21   :  { %322 = vmatpush.bf16.msra.mxu2 %v1494_v11  ;;  %400 = vmatpush.msra.mxu0 %v370_v37  ;;  %v1503_v37 = vld [vmem:[%s1984_s6 + $0x18] sm:$0xff] }
  0x22   :  { %380 = vmatpush.msra.mxu3 %v369_v38 }
  0x23   :  { %401 = vmatpush.msra.mxu0 %v369_v38  ;;  %v1519_v38 = vld [vmem:[%s1984_s6 + $0x98] sm:$0xff] }
  0x24   :  { %177 = vmatpush.bf16.msra.mxu1 %v1485_v12  ;;  %381 = vmatpush.msra.mxu3 %v368_v39 }
  0x25   :  { %323 = vmatpush.bf16.msra.mxu2 %v1493_v13  ;;  %402 = vmatpush.msra.mxu0 %v368_v39 }
  0x26   :  { %382 = vmatpush.msra.mxu3 %v367_v41 }
  0x27   :  { %403 = vmatpush.msra.mxu0 %v367_v41  ;;  %v1510_v41 = vld [vmem:[%s1984_s6 + $0x50] sm:$0xff] }
  0x28   :  { %178 = vmatpush.bf16.msra.mxu1 %v1484_v14  ;;  %383 = vmatpush.msra.mxu3 %v366_v42 }
  0x29   :  { %324 = vmatpush.bf16.msra.mxu2 %v1492_v18  ;;  %404 = vmatpush.msra.mxu0 %v366_v42  ;;  %v1618_v18 = vmov 0.0   ;;  %v1502_v42 = vld [vmem:[%s1984_s6 + $0x10] sm:$0xff] }
  0x2a   :  { %384 = vmatpush.msra.mxu3 %v365_v43  ;;  %76 = vst [vmem:[#allocation2] sm:$0xff] %v1618_v18 }
  0x2b   :  { %179 = vmatmul.bf16.vlgmr.msra.gmra.mxu1 %v105_v21  ;;  %405 = vmatpush.msra.mxu0 %v365_v43  ;;  %77 = vst [vmem:[#allocation2 + $0x8] sm:$0xff] %v1618_v18  ;;  %v1523_v21 = vld [vmem:[%s1984_s6 + $0xb8] sm:$0xff]  ;;  %v1518_v43 = vld [vmem:[%s1984_s6 + $0x90] sm:$0xff] }
  0x2c   :  { %233 = vmatpush.bf16.msrb.mxu1 %v1483_v15  ;;  %325 = vmatmul.bf16.vlgmr.msra.gmra.mxu2 %v251_v22  ;;  %78 = vst [vmem:[#allocation2 + $0x10] sm:$0xf] %v1618_v18  ;;  %v1514_v22 = vld [vmem:[%s1984_s6 + $0x70] sm:$0xff] }
  0x2d   :  { %385 = vmatpush.msra.mxu3 %v364_v44  ;;  %406 = vmatpush.msra.mxu0 %v364_v44  ;;  %79 = vst [vmem:[#allocation3] sm:$0xff] %v1618_v18 }
  0x2e   :  { %80 = vst [vmem:[#allocation3 + $0x8] sm:$0xf] %v1618_v18  ;;  %608 = vmatpush.bf16.msrb.mxu2 %v1507_v20 }
  0x2f   :  { %386 = vmatpush.msra.mxu3 %v363_v45  ;;  %407 = vmatpush.msra.mxu0 %v363_v45  ;;  %v1509_v45 = vld [vmem:[%s1984_s6 + $0x48] sm:$0xff] }
  0x30   :  { %234 = vmatpush.bf16.msrb.mxu1 %v1482_v23  ;;  %v1506_v23 = vld [vmem:[%s1984_s6 + $0x30] sm:$0xff] }
  0x31   :  { %387 = vmatpush.msra.mxu3 %v362_v46  ;;  %408 = vmatpush.msra.mxu0 %v362_v46  ;;  %v1501_v46 = vld [vmem:[%s1984_s6 + $0x8] sm:$0xff] }
  0x32   :  { %609 = vmatpush.bf16.msrb.mxu2 %v1506_v23  ;;  %v741_v23 = vld [vmem:[#allocation6 + $0x60] sm:$0xff] }
  0x33   :  { %388 = vmatpush.msra.mxu3 %v361_v48  ;;  %409 = vmatpush.msra.mxu0 %v361_v48  ;;  %v1508_v48 = vld [vmem:[%s1984_s6 + $0x40] sm:$0xff] }
  0x34   :  { %235 = vmatpush.bf16.msrb.mxu1 %v1481_v24  ;;  %v1522_v24 = vld [vmem:[%s1984_s6 + $0xb0] sm:$0xff] }
  0x35   :  { %389 = vmatpush.msra.mxu3 %v360_v49  ;;  %410 = vmatpush.msra.mxu0 %v360_v49  ;;  %v1500_v49 = vld [vmem:[%s1984_s6] sm:$0xff] }
  0x37   :  { %390 = vmatpush.msra.mxu3 %v359_v50  ;;  %411 = vmatpush.msra.mxu0 %v359_v50  ;;  %v1516_v50 = vld [vmem:[%s1984_s6 + $0x80] sm:$0xff] }
  0x38   :  { %236 = vmatpush.bf16.msrb.mxu1 %v1480_v25  ;;  %v1513_v25 = vld [vmem:[%s1984_s6 + $0x68] sm:$0xff] }
  0x39   :  { %695 = vmatpush.bf16.msrb.mxu3 %v1523_v21  ;;  %v743_v21 = vld [vmem:[#allocation6 + $0x70] sm:$0xff] }
  0x3c   :  { %237 = vmatpush.bf16.msrb.mxu1 %v1479_v26  ;;  %v1505_v26 = vld [vmem:[%s1984_s6 + $0x28] sm:$0xff] }
  0x3d   :  { %696 = vmatpush.bf16.msrb.mxu3 %v1522_v24  ;;  %610 = vmatpush.bf16.msrb.mxu2 %v1505_v26  ;;  %v740_v24 = vld [vmem:[#allocation6 + $0x58] sm:$0xff]  ;;  %v738_v26 = vld [vmem:[#allocation6 + $0x48] sm:$0xff] }
  0x40   :  { %238 = vmatpush.bf16.msrb.mxu1 %v1478_v27  ;;  %v1521_v27 = vld [vmem:[%s1984_s6 + $0xa8] sm:$0xff] }
  0x41   :  { %697 = vmatpush.bf16.msrb.mxu3 %v1521_v27  ;;  %611 = vmatpush.bf16.msrb.mxu2 %v1504_v31  ;;  %v737_v27 = vld [vmem:[#allocation6 + $0x40] sm:$0xff] }
  0x42   :  { %v733_v31 = vld [vmem:[#allocation6 + $0x20] sm:$0xff] }
  0x44   :  { %239 = vmatpush.bf16.msrb.mxu1 %v1477_v28 }
  0x45   :  { %612 = vmatpush.bf16.msrb.mxu2 %v1503_v37 }
  0x48   :  { %240 = vmatpush.bf16.msrb.mxu1 %v1476_v29 }
  0x49   :  { %613 = vmatpush.bf16.msrb.mxu2 %v1502_v42 }
  0x4b   :  { %241 = vmatmul.bf16.vlgmr.msrb.gmra.mxu1 %v84_v32  ;;  %v1520_v32 = vld [vmem:[%s1984_s6 + $0xa0] sm:$0xff] }
  0x4c   :  { %547 = vmatpush.bf16.msra.mxu1 %v1515_v19  ;;  %698 = vmatpush.bf16.msrb.mxu3 %v1520_v32  ;;  %v732_v32 = vld [vmem:[#allocation6 + $0x18] sm:$0xff] }
  0x4d   :  { %614 = vmatpush.bf16.msrb.mxu2 %v1501_v46 }
  0x50   :  { %548 = vmatpush.bf16.msra.mxu1 %v1514_v22  ;;  %699 = vmatpush.bf16.msrb.mxu3 %v1519_v38  ;;  %v742_v22 = vld [vmem:[#allocation6 + $0x68] sm:$0xff] }
  0x51   :  { %615 = vmatpush.bf16.msrb.mxu2 %v1500_v49 }
  0x54   :  { %549 = vmatpush.bf16.msra.mxu1 %v1513_v25  ;;  %700 = vmatpush.bf16.msrb.mxu3 %v1518_v43  ;;  %v739_v25 = vld [vmem:[#allocation6 + $0x50] sm:$0xff] }
  0x58   :  { %550 = vmatpush.bf16.msra.mxu1 %v1512_v30  ;;  %v734_v30 = vld [vmem:[#allocation6 + $0x28] sm:$0xff] }
  0x5c   :  { %551 = vmatpush.bf16.msra.mxu1 %v1511_v36 }
  0x60   :  { %552 = vmatpush.bf16.msra.mxu1 %v1510_v41 }
  0x64   :  { %553 = vmatpush.bf16.msra.mxu1 %v1509_v45 }
  0x68   :  { %554 = vmatpush.bf16.msra.mxu1 %v1508_v48 }
  0xa8   :  { %v180_v40 = vpop.f32.mrf.mxu1 }
  0xaf   :  { %v326_v51 = vpop.f32.mrf.mxu2 }
  0xb0   :  { %v182_v47 = vpop.f32.mrf.mxu1 }
  0xb7   :  { %v328_v59 = vpop.f32.mrf.mxu2 }
  0xc8   :  { %v242_v52 = vpop.f32.mrf.mxu1 }
  0xc9   :  { %v243_v53 = vadd.f32 %v242_v52, %v180_v40 }
  0xcb   :  { %v331_v54 = vadd.f32 %v326_v51, %v243_v53 }
  0xcd   :  { %v337_v56 = vadd.f32 %v1553_v55, %v331_v54 }
  0xcf   :  { %v339_v60 = vmul.f32 0.01, %v337_v56 }
  0xd0   :  { %v244_v57 = vpop.f32.mrf.mxu1 }
  0xd1   :  { %v245_v58 = vadd.f32 %v244_v57, %v182_v47  ;;  %v1788_v63 = vmax.f32 %v337_v56, %v339_v60  ;;  %v1517_v47 = vld [vmem:[%s1984_s6 + $0x88] sm:$0xff]  ;;  %v420_v57 = vld [vmem:[%s1982_s4] sm:$0x1] }
  0xd2   :  { %701 = vmatpush.bf16.msrb.mxu3 %v1517_v47 }
  0xd3   :  { %v332_v61 = vadd.f32 %v328_v59, %v245_v58  ;;  %v350_v3 = vmul.f32 %v1788_v63, %v1788_v63 }
  0xd5   :  { %v338_v62 = vadd.f32 %v1553_v55, %v332_v61  ;;  %v744_v55 = vld [vmem:[#allocation6 + $0x78] sm:$0xff] }
  0xd6   :  { %702 = vmatpush.bf16.msrb.mxu3 %v1516_v50  ;;  %745 = vmatpush.msrb.mxu0 %v744_v55  ;;  %v433_v61 = vld [vmem:[%s1983_s5] sm:$0x1] }
  0xd7   :  { %v340_v0 = vmul.f32 0.01, %v338_v62  ;;  %766 = vmatpush.msrb.mxu1 %v744_v55 }
  0xd8   :  { %746 = vmatpush.msrb.mxu0 %v743_v21 }
  0xd9   :  { %v1790_v1 = vmax.f32 %v338_v62, %v340_v0  ;;  %767 = vmatpush.msrb.mxu1 %v743_v21  ;;  %v1542_v21 = vld [vmem:[%s1989_s11 + $0x90] sm:$0xff] }
  0xda   :  { %747 = vmatpush.msrb.mxu0 %v742_v22 }
  0xdb   :  { %v343_v2 = vadd.f32 %v1790_v1, %v1788_v63  ;;  %v351_v4 = vmul.f32 %v1790_v1, %v1790_v1  ;;  %768 = vmatpush.msrb.mxu1 %v742_v22 }
  0xdc   :  { %748 = vmatpush.msrb.mxu0 %v741_v23 }
  0xdd   :  { %v344_v5 = vrot.slane %v343_v2, 4  ;;  %v352_v6 = vadd.f32 %v351_v4, %v350_v3  ;;  %769 = vmatpush.msrb.mxu1 %v741_v23  ;;  %v1533_v23 = vld [vmem:[%s1989_s11 + $0x48] sm:$0xff] }
  0xde   :  { %749 = vmatpush.msrb.mxu0 %v740_v24 }
  0xdf   :  { %v345_v7 = vadd.f32 %v344_v5, %v343_v2  ;;  %v353_v8 = vrot.slane %v352_v6, 4  ;;  %770 = vmatpush.msrb.mxu1 %v740_v24  ;;  %v1525_v24 = vld [vmem:[%s1989_s11 + $0x8] sm:$0xff] }
  0xe0   :  { %750 = vmatpush.msrb.mxu0 %v739_v25 }
  0xe1   :  { %v346_v9 = vrot.slane %v345_v7, 2  ;;  %v354_v10 = vadd.f32 %v353_v8, %v352_v6  ;;  %771 = vmatpush.msrb.mxu1 %v739_v25  ;;  %v1541_v25 = vld [vmem:[%s1989_s11 + $0x88] sm:$0xff] }
  0xe2   :  { %751 = vmatpush.msrb.mxu0 %v738_v26 }
  0xe3   :  { %v347_v11 = vadd.f32 %v346_v9, %v345_v7  ;;  %v355_v12 = vrot.slane %v354_v10, 2  ;;  %772 = vmatpush.msrb.mxu1 %v738_v26  ;;  %v1532_v26 = vld [vmem:[%s1989_s11 + $0x40] sm:$0xff] }
  0xe4   :  { %752 = vmatpush.msrb.mxu0 %v737_v27 }
  0xe5   :  { %v348_v13 = vrot.slane %v347_v11, 1  ;;  %v356_v14 = vadd.f32 %v355_v12, %v354_v10  ;;  %773 = vmatpush.msrb.mxu1 %v737_v27  ;;  %v1524_v27 = vld [vmem:[%s1989_s11] sm:$0xff] }
  0xe7   :  { %v349_v15 = vadd.f32 %v348_v13, %v347_v11  ;;  %v357_v16 = vrot.slane %v356_v14, 1 }
  0xe9   :  { %391 = vmatmul.f32.vlgmr.msra.gmra.mxu3 %v349_v15  ;;  %v358_v17 = vadd.f32 %v357_v16, %v356_v14 }
  0xeb   :  { %412 = vmatmul.f32.vlgmr.msra.gmra.mxu0 %v358_v17 }
 0x168   :  { %v413_v28 = vpop.f32.mrf.mxu0 }
 0x169   :  { %v416_v34 = vmul.f32 0.0078125, %v413_v28  ;;  %v736_v28 = vld [vmem:[#allocation6 + $0x38] sm:$0xff] }
 0x16a   :  { %753 = vmatpush.msrb.mxu0 %v736_v28  ;;  %774 = vmatpush.msrb.mxu1 %v736_v28  ;;  %v1540_v28 = vld [vmem:[%s1989_s11 + $0x80] sm:$0xff] }
 0x16c   :  { %v392_v29 = vpop.f32.mrf.mxu3 }
 0x16d   :  { %v395_v33 = vmul.f32 0.0078125, %v392_v29  ;;  %v735_v29 = vld [vmem:[#allocation6 + $0x30] sm:$0xff] }
 0x16e   :  { %754 = vmatpush.msrb.mxu0 %v735_v29  ;;  %775 = vmatpush.msrb.mxu1 %v735_v29 }
 0x16f   :  { %v417_v35 = vmul.f32 %v395_v33, %v395_v33 }
 0x170   :  { %755 = vmatpush.msrb.mxu0 %v734_v30  ;;  %776 = vmatpush.msrb.mxu1 %v734_v30 }
 0x171   :  { %v418_v39 = vsub.f32 %v416_v34, %v417_v35  ;;  %v730_v34 = vld [vmem:[#allocation6 + $0x8] sm:$0xff]  ;;  %v729_v35 = vld [vmem:[#allocation6] sm:$0xff] }
 0x172   :  { %756 = vmatpush.msrb.mxu0 %v733_v31  ;;  %777 = vmatpush.msrb.mxu1 %v733_v31 }
 0x173   :  { %v419_v40 = vmax.f32 %v418_v39, 0.0  ;;  %v1554_v39 = vld [vmem:[%s1985_s7] ss:$0 sm:$0xff] }
 0x174   :  { %757 = vmatpush.msrb.mxu0 %v732_v32  ;;  %778 = vmatpush.msrb.mxu1 %v732_v32 }
 0x175   :  { %v421_v44 = vadd.f32 1e-05, %v419_v40 }
 0x177   :  { %1556 = vrsqrt.f32 %v421_v44  ;;  %vm428_vm1 = vweird.f32 %v421_v44 }
 0x17d   :  { %v1557_v51 = vpop.eup %1556 }
 0x17e   :  { %v423_v52 = vmul.f32 %v1557_v51, %v421_v44  ;;  %vm429_vm0 = vweird.f32 %v1557_v51 }
 0x17f   :  { %vm430_vm2 = vmor %vm428_vm1, %vm429_vm0 }
 0x180   :  { %v424_v53 = vmul.f32 %v1557_v51, %v423_v52 }
 0x182   :  { %v425_v54 = vmul.f32 0.5, %v424_v53 }
 0x184   :  { %v426_v56 = vsub.f32 1.5, %v425_v54 }
 0x186   :  { %v427_v58 = vmul.f32 %v1557_v51, %v426_v56 }
 0x188   :  { %v431_v59 = vsel %vm430_vm2, %v1557_v51, %v427_v58 }
 0x189   :  { %v432_v60 = vmul.f32 %v431_v59, %v420_v57 }
 0x18b   :  { %v434_v62 = vmul.f32 %v432_v60, %v395_v33  ;;  %v437_v0 = vperm.slane %v432_v60, 0  ;;  %v731_v33 = vld [vmem:[#allocation6 + $0x10] sm:$0xff] }
 0x18c   :  { %758 = vmatpush.msrb.mxu0 %v731_v33  ;;  %779 = vmatpush.msrb.mxu1 %v731_v33 }
 0x18d   :  { %v435_v2 = vsub.f32 %v433_v61, %v434_v62  ;;  %v439_v3 = vmul.f32 %v437_v0, %v1788_v63  ;;  %v440_v4 = vmul.f32 %v437_v0, %v1790_v1  ;;  %v1539_v61 = vld [vmem:[%s1989_s11 + $0x78] sm:$0xff] }
 0x18e   :  { %759 = vmatpush.msrb.mxu0 %v730_v34  ;;  %780 = vmatpush.msrb.mxu1 %v730_v34  ;;  %v1531_v62 = vld [vmem:[%s1989_s11 + $0x38] sm:$0xff]  ;;  %v790_v34 = vld [vmem:[%s1987_s9] sm:$0x1] }
 0x18f   :  { %v442_v5 = vperm.slane %v435_v2, 0  ;;  %v1547_v0 = vld [vmem:[%s1989_s11 + $0xb8] sm:$0xff]  ;;  %911 = vmatpush.bf16.msra.mxu2 %v1539_v61  ;;  %972 = vmatpush.bf16.msra.mxu3 %v1531_v62  ;;  %v1538_v2 = vld [vmem:[%s1989_s11 + $0x70] sm:$0xff] }
 0x190   :  { %760 = vmatpush.msrb.mxu0 %v729_v35  ;;  %781 = vmatpush.msrb.mxu1 %v729_v35 }
 0x191   :  { %v444_v6 = vadd.f32 %v442_v5, %v439_v3  ;;  %v445_v7 = vadd.f32 %v442_v5, %v440_v4  ;;  %v1530_v3 = vld [vmem:[%s1989_s11 + $0x30] sm:$0xff]  ;;  %v1537_v5 = vld [vmem:[%s1989_s11 + $0x68] sm:$0xff] }
 0x192   :  { %1057 = vmatpush.bf16.msra.mxu0 %v1547_v0  ;;  %v1546_v4 = vld [vmem:[%s1989_s11 + $0xb0] sm:$0xff] }
 0x193   :  { %446 = vst [vmem:[#allocation2 + $0x1] sm:$0xff] %v444_v6  ;;  %912 = vmatpush.bf16.msra.mxu2 %v1538_v2  ;;  %973 = vmatpush.bf16.msra.mxu3 %v1530_v3  ;;  %v1529_v6 = vld [vmem:[%s1989_s11 + $0x28] sm:$0xff]  ;;  %v1555_v2 = vld [vmem:[%s1990_s12] ss:$0 sm:$0xff] }
 0x194   :  { %447 = vst [vmem:[#allocation2 + $0xb] sm:$0xff] %v445_v7  ;;  %v1545_v7 = vld [vmem:[%s1989_s11 + $0xa8] sm:$0xff] }
 0x196   :  { %1058 = vmatpush.bf16.msra.mxu0 %v1546_v4 }
 0x197   :  { %913 = vmatpush.bf16.msra.mxu2 %v1537_v5  ;;  %974 = vmatpush.bf16.msra.mxu3 %v1529_v6 }
 0x19a   :  { %v474_v10 = vld [vmem:[#allocation2 + $0x1] ss:$2 sm:$0xf]  ;;  %v448_v13 = vld [vmem:[#allocation2] ss:$2 sm:$0xf]  ;;  %1059 = vmatpush.bf16.msra.mxu0 %v1545_v7 }
 0x19b   :  { %v476_v8 = vld [vmem:[#allocation2 + $0xb] ss:$2 sm:$0xf]  ;;  %v450_v9 = vld [vmem:[#allocation2 + $0xa] ss:$2 sm:$0xf] }
 0x19c   :  { %v478_v11 = vrot.slane %v476_v8, 4  ;;  %v452_v12 = vrot.slane %v450_v9, 4  ;;  %v624_v14 = vld [vmem:[#allocation2 + $0xc] ss:$2 sm:$0xf] }
 0x19d   :  { %v626_v63 = vrot.slane %v624_v14, 4  ;;  %v622_v18 = vld [vmem:[#allocation2 + $0x2] ss:$2 sm:$0xf] }
 0x19e   :  { %v480_v15 = vsel %vm454_vm3, %v474_v10, %v478_v11  ;;  %v455_v16 = vsel %vm454_vm3, %v448_v13, %v452_v12  ;;  %v1536_v10 = vld [vmem:[%s1989_s11 + $0x60] sm:$0xff] }
 0x19f   :  { %v481_v17 = vpack.c.bf16 %v480_v15, %v480_v15  ;;  %v456_v1 = vpack.c.bf16 %v455_v16, %v455_v16  ;;  %v628_v19 = vsel %vm454_vm3, %v622_v18, %v626_v63  ;;  %v1528_v11 = vld [vmem:[%s1989_s11 + $0x20] sm:$0xff]  ;;  %914 = vmatpush.bf16.msra.mxu2 %v1536_v10  ;;  %v1535_v63 = vld [vmem:[%s1989_s11 + $0x58] sm:$0xff] }
 0x1a0   :  { %v629_v20 = vpack.c.bf16 %v628_v19, %v628_v19  ;;  %v1544_v12 = vld [vmem:[%s1989_s11 + $0xa0] sm:$0xff]  ;;  %975 = vmatpush.bf16.msra.mxu3 %v1528_v11  ;;  %v1534_v19 = vld [vmem:[%s1989_s11 + $0x50] sm:$0xff] }
 0x1a1   :  { %555 = vmatmul.bf16.vlgmr.msra.gmra.mxu1 %v481_v17  ;;  %616 = vmatmul.bf16.vlgmr.msrb.gmra.mxu2 %v456_v1  ;;  %v1527_v17 = vld [vmem:[%s1989_s11 + $0x18] sm:$0xff] }
 0x1a2   :  { %703 = vmatmul.bf16.vlgmr.msrb.gmra.mxu3 %v629_v20  ;;  %1060 = vmatpush.bf16.msra.mxu0 %v1544_v12  ;;  %v1543_v1 = vld [vmem:[%s1989_s11 + $0x98] sm:$0xff]  ;;  %v1526_v20 = vld [vmem:[%s1989_s11 + $0x10] sm:$0xff] }
 0x1a3   :  { %915 = vmatpush.bf16.msra.mxu2 %v1535_v63 }
 0x1a4   :  { %976 = vmatpush.bf16.msra.mxu3 %v1527_v17 }
 0x1a6   :  { %1061 = vmatpush.bf16.msra.mxu0 %v1543_v1 }
 0x1a7   :  { %916 = vmatpush.bf16.msra.mxu2 %v1534_v19 }
 0x1a8   :  { %977 = vmatpush.bf16.msra.mxu3 %v1526_v20 }
 0x1aa   :  { %1062 = vmatpush.bf16.msra.mxu0 %v1542_v21 }
 0x1ab   :  { %917 = vmatpush.bf16.msra.mxu2 %v1533_v23 }
 0x1ac   :  { %978 = vmatpush.bf16.msra.mxu3 %v1525_v24 }
 0x1ae   :  { %1063 = vmatpush.bf16.msra.mxu0 %v1541_v25 }
 0x1af   :  { %918 = vmatpush.bf16.msra.mxu2 %v1532_v26 }
 0x1b0   :  { %979 = vmatpush.bf16.msra.mxu3 %v1524_v27 }
 0x1b2   :  { %1064 = vmatpush.bf16.msra.mxu0 %v1540_v28 }
 0x21e   :  { %v556_v36 = vpop.f32.mrf.mxu1 }
 0x224   :  { %v617_v37 = vpop.f32.mrf.mxu2 }
 0x225   :  { %v618_v38 = vadd.f32 %v617_v37, %v556_v36  ;;  %v704_v40 = vpop.f32.mrf.mxu3 }
 0x226   :  { %v558_v41 = vpop.f32.mrf.mxu1 }
 0x227   :  { %v708_v42 = vadd.f32 %v704_v40, %v618_v38  ;;  %v803_v38 = vld [vmem:[%s1988_s10] sm:$0x1] }
 0x229   :  { %v713_v43 = vadd.f32 %v1554_v39, %v708_v42 }
 0x22b   :  { %v714_v44 = vmul.f32 0.01, %v713_v43 }
 0x22c   :  { %v619_v45 = vpop.f32.mrf.mxu2 }
 0x22d   :  { %v1884_v46 = vmax.f32 %v713_v43, %v714_v44  ;;  %v706_v47 = vpop.f32.mrf.mxu3 }
 0x22f   :  { %v722_v48 = vmul.f32 %v1884_v46, %v1884_v46  ;;  %v716_v49 = vrot.slane %v1884_v46, 4 }
 0x231   :  { %v717_v50 = vadd.f32 %v716_v49, %v1884_v46  ;;  %v723_v51 = vrot.slane %v722_v48, 4 }
 0x233   :  { %v718_v52 = vrot.slane %v717_v50, 2  ;;  %v724_v53 = vadd.f32 %v723_v51, %v722_v48 }
 0x235   :  { %v719_v54 = vadd.f32 %v718_v52, %v717_v50  ;;  %v725_v55 = vrot.slane %v724_v53, 2 }
 0x237   :  { %v720_v56 = vrot.slane %v719_v54, 1  ;;  %v726_v57 = vadd.f32 %v725_v55, %v724_v53 }
 0x239   :  { %v721_v58 = vadd.f32 %v720_v56, %v719_v54  ;;  %v727_v59 = vrot.slane %v726_v57, 1 }
 0x23b   :  { %761 = vmatmul.f32.vlgmr.msrb.gmra.mxu0 %v721_v58  ;;  %v728_v60 = vadd.f32 %v727_v59, %v726_v57 }
 0x23d   :  { %782 = vmatmul.f32.vlgmr.msrb.gmra.mxu1 %v728_v60 }
 0x2b8   :  { %v762_v8 = vpop.f32.mrf.mxu0 }
 0x2b9   :  { %v765_v9 = vmul.f32 0.03125, %v762_v8 }
 0x2ba   :  { %v783_v13 = vpop.f32.mrf.mxu1 }
 0x2bb   :  { %v787_v14 = vmul.f32 %v765_v9, %v765_v9  ;;  %v786_v15 = vmul.f32 0.03125, %v783_v13 }
 0x2bd   :  { %v788_v16 = vsub.f32 %v786_v15, %v787_v14 }
 0x2bf   :  { %v789_v18 = vmax.f32 %v788_v16, 0.0 }
 0x2c1   :  { %v791_v22 = vadd.f32 1e-05, %v789_v18 }
 0x2c3   :  { %1558 = vrsqrt.f32 %v791_v22  ;;  %vm798_vm5 = vweird.f32 %v791_v22 }
 0x2c9   :  { %v1559_v29 = vpop.eup %1558 }
 0x2ca   :  { %v793_v30 = vmul.f32 %v1559_v29, %v791_v22  ;;  %vm799_vm4 = vweird.f32 %v1559_v29 }
 0x2cb   :  { %vm800_vm6 = vmor %vm798_vm5, %vm799_vm4 }
 0x2cc   :  { %v794_v31 = vmul.f32 %v1559_v29, %v793_v30 }
 0x2ce   :  { %v795_v32 = vmul.f32 0.5, %v794_v31 }
 0x2d0   :  { %v796_v33 = vsub.f32 1.5, %v795_v32 }
 0x2d2   :  { %v797_v35 = vmul.f32 %v1559_v29, %v796_v33 }
 0x2d4   :  { %v801_v36 = vsel %vm800_vm6, %v1559_v29, %v797_v35 }
 0x2d5   :  { %v802_v37 = vmul.f32 %v801_v36, %v790_v34 }
 0x2d7   :  { %v804_v39 = vmul.f32 %v802_v37, %v765_v9  ;;  %v807_v40 = vperm.slane %v802_v37, 0 }
 0x2d9   :  { %v805_v41 = vsub.f32 %v803_v38, %v804_v39  ;;  %v809_v42 = vmul.f32 %v807_v40, %v1884_v46 }
 0x2db   :  { %v811_v43 = vperm.slane %v805_v41, 0 }
 0x2dd   :  { %v813_v44 = vadd.f32 %v811_v43, %v809_v42 }
 0x2df   :  { %814 = vst [vmem:[#allocation3 + $0x1] sm:$0xf] %v813_v44 }
 0x2e0   :  { %815 = vst [vmem:[#allocation3 + $0x3] sm:$0xf0] %v813_v44 }
 0x2e6   :  { %v839_v52 = vld [vmem:[#allocation3 + $0x1] sm:$0xf] }
 0x2e7   :  { %v840_v45 = vld [vmem:[#allocation3 + $0x7] sm:$0xf]  ;;  %v816_v53 = vld [vmem:[#allocation3] sm:$0xf] }
 0x2e8   :  { %v817_v47 = vld [vmem:[#allocation3 + $0x6] sm:$0xf]  ;;  %v842_v49 = vrot.slane %v840_v45, 4  ;;  %v985_v54 = vld [vmem:[#allocation3 + $0x2] sm:$0xf] }
 0x2e9   :  { %v986_v48 = vld [vmem:[#allocation3 + $0x8] sm:$0xf]  ;;  %v819_v50 = vrot.slane %v817_v47, 4 }
 0x2ea   :  { %v988_v51 = vrot.slane %v986_v48, 4  ;;  %v844_v55 = vsel %vm454_vm3, %v839_v52, %v842_v49 }
 0x2eb   :  { %v821_v56 = vsel %vm454_vm3, %v816_v53, %v819_v50  ;;  %v845_v46 = vpack.c.bf16 %v844_v55, %v844_v55 }
 0x2ec   :  { %v990_v57 = vsel %vm454_vm3, %v985_v54, %v988_v51  ;;  %v822_v58 = vpack.c.bf16 %v821_v56, %v821_v56 }
 0x2ed   :  { %v991_v59 = vpack.c.bf16 %v990_v57, %v990_v57  ;;  %919 = vmatmul.bf16.vlgmr.msra.gmra.mxu2 %v845_v46 }
 0x2ee   :  { %980 = vmatmul.bf16.vlgmr.msra.gmra.mxu3 %v822_v58 }
 0x2ef   :  { %1065 = vmatmul.bf16.vlgmr.msra.gmra.mxu0 %v991_v59 }
 0x36c   :  { %v1066_v60 = vpop.f32.mrf.mxu0 }
 0x370   :  { %v920_v61 = vpop.f32.mrf.mxu2 }
 0x371   :  { %v981_v62 = vpop.f32.mrf.mxu3 }
 0x372   :  { %v982_v0 = vadd.f32 %v981_v62, %v920_v61 }
 0x374   :  { %v1070_v3 = vadd.f32 %v1066_v60, %v982_v0  ;;  %v1068_v4 = vpop.f32.mrf.mxu0 }
 0x376   :  { %v1075_v5 = vadd.f32 %v1555_v2, %v1070_v3 }
 0x378   :  { %v1076_v6 = vmul.f32 0.5, %v1075_v5  ;;  %v922_v7 = vpop.f32.mrf.mxu2 }
 0x379   :  { %v983_v8 = vpop.f32.mrf.mxu3 }
 0x37a   :  { %1560 = vtanh.f32 %v1076_v6 }
 0x380   :  { %v1561_v9 = vpop.eup %1560 }
 0x381   :  { %v1078_v10 = vadd.f32 1.0, %v1561_v9 }
 0x383   :  { %v1079_v11 = vmul.f32 0.5, %v1078_v10 }
 0x385   :  { %1080 = vst [vmem:[%s1991_s13] sm:$0xff] %v1079_v11 }
 0x386   :  { %1085 = vsyncpa [#allocation5], 1 }
 0x387   :  { %1086 = vsyncpa [#allocation7], 1 }

</bundles_post_ra>
